<compile_context>
chip_gen: v7x
topology: tpu7x:2x2x1
jax: 0.10.0
libtpu: 0.0.40
codegen_flags: <defaults>
</compile_context>

<pallas_src>
import functools

import jax
import jax.numpy as jnp
from jax.experimental import pallas as pl
from jax.experimental.pallas import tpu as pltpu

HIDDEN = 128


def _round_up(n, m):
    return ((n + m - 1) // m) * m


def _cdiv(a, b):
    return -(-a // b)


def actor_kernel(x_ref, w1_ref, b1_ref, w2_ref, b2_ref, w3_ref, b3_ref, out_ref):
    # Layer 1: Linear(Din,128) + ReLU.  bf16 operands -> MXU, f32 accumulate.
    h1 = jnp.dot(x_ref[...], w1_ref[...], preferred_element_type=jnp.float32)
    h1 = jnp.maximum(h1 + b1_ref[...], 0.0).astype(jnp.bfloat16)
    # Layer 2: Linear(128,128) + ReLU.
    h2 = jnp.dot(h1, w2_ref[...], preferred_element_type=jnp.float32)
    h2 = jnp.maximum(h2 + b2_ref[...], 0.0).astype(jnp.bfloat16)
    # Layer 3: Linear(128, A) logits (no activation), stored lane-native in f32.
    logits = jnp.dot(h2, w3_ref[...], preferred_element_type=jnp.float32)
    out_ref[...] = (logits + b3_ref[...]).astype(out_ref.dtype)


def _choose_batch_tile(B, tb_cap):
    """Pick (TB, num_tiles): TB multiple of 8, TB <= tb_cap, minimal padding."""
    B8 = _round_up(B, 8)
    num_tiles = _cdiv(B8, tb_cap)
    # For large batches keep >=2 grid steps so v7x's 2 TensorCores both work.
    if B8 >= 1024:
        num_tiles = max(num_tiles, 2)
    TB = _round_up(_cdiv(B8, num_tiles), 8)
    return TB, num_tiles


@functools.partial(jax.jit, static_argnames=("tb_cap",))
def actor_forward(x, params, *, tb_cap=2048):
    """x: (B, input_dim) float32.  params: dict of w1,b1,w2,b2,w3,b3.

    Returns logits of shape (B, action_dim), float32.
    """
    w1, b1 = params["w1"], params["b1"]
    w2, b2 = params["w2"], params["b2"]
    w3, b3 = params["w3"], params["b3"]
    B, Din = x.shape
    H1 = w1.shape[1]
    H2 = w2.shape[1]
    A = w3.shape[1]

    # bf16 operands for the MXU (no-ops if params were pre-cast via
    # prepare_params); biases and the output stay f32.
    x_bf = x.astype(jnp.bfloat16)
    w1 = w1.astype(jnp.bfloat16)
    w2 = w2.astype(jnp.bfloat16)
    w3 = w3.astype(jnp.bfloat16)
    b1 = b1.astype(jnp.float32)
    b2 = b2.astype(jnp.float32)
    b3 = b3.astype(jnp.float32)

    # Batch tiling: only the batch dim ever gets (zero) padding.
    TB, num_tiles = _choose_batch_tile(B, tb_cap)
    B_p = TB * num_tiles
    if B_p != B:
        x_bf = jnp.pad(x_bf, ((0, B_p - B), (0, 0)))

    # x / out tiles walk the batch; weights & biases stay resident in VMEM
    # (constant (0,0) block index).
    res = lambda shape: pl.BlockSpec(shape, lambda i: (0, 0))

    out_p = pl.pallas_call(
        actor_kernel,
        out_shape=jax.ShapeDtypeStruct((B_p, A), jnp.float32),
        grid=(num_tiles,),
        in_specs=[
            pl.BlockSpec((TB, Din), lambda i: (i, 0)),
            res((Din, H1)), res((1, H1)),
            res((H1, H2)), res((1, H2)),
            res((H2, A)), res((1, A)),
        ],
        out_specs=pl.BlockSpec((TB, A), lambda i: (i, 0)),
        compiler_params=pltpu.CompilerParams(
            dimension_semantics=("parallel",),
        ),
    )(x_bf, w1, b1, w2, b2, w3, b3)

    # Drop batch padding only (no lane padding to strip).
    return out_p[:B]


def prepare_params(params):
    """Hoist the bf16 weight casts out of the per-call path (call once)."""
    return dict(
        w1=params["w1"].astype(jnp.bfloat16), b1=params["b1"].astype(jnp.float32),
        w2=params["w2"].astype(jnp.bfloat16), b2=params["b2"].astype(jnp.float32),
        w3=params["w3"].astype(jnp.bfloat16), b3=params["b3"].astype(jnp.float32),
    )


def init_params(key, input_dim, action_dim, hidden=HIDDEN):
    """Deterministic synthetic init (uniform, like PyTorch's default fan-in bound)."""
    ks = jax.random.split(key, 6)

    def linear(kw, kb, fan_in, fan_out):
        bound = 1.0 / jnp.sqrt(fan_in)
        w = jax.random.uniform(kw, (fan_in, fan_out), jnp.float32, -bound, bound)
        b = jax.random.uniform(kb, (1, fan_out), jnp.float32, -bound, bound)
        return w, b

    w1, b1 = linear(ks[0], ks[1], input_dim, hidden)
    w2, b2 = linear(ks[2], ks[3], hidden, hidden)
    w3, b3 = linear(ks[4], ks[5], hidden, action_dim)
    return dict(w1=w1, b1=b1, w2=w2, b2=b2, w3=w3, b3=b3)


def actor_reference(x, params):
    """Pure-f32 reference with the exact PyTorch-module semantics."""
    h1 = jnp.maximum(x @ params["w1"] + params["b1"], 0.0)
    h2 = jnp.maximum(h1 @ params["w2"] + params["b2"], 0.0)
    return h2 @ params["w3"] + params["b3"]


if __name__ == "__main__":
    key = jax.random.PRNGKey(0)
    k_param, k_x1, k_x2 = jax.random.split(key, 3)

    # Small shapes consistent with the module: TrafficJunction-style obs dim 32,
    # discrete action space of size 8.
    input_dim, action_dim = 32, 8
    params_f32 = init_params(k_param, input_dim, action_dim)
    params = prepare_params(params_f32)   # bf16 weights, cast once

    # 1) tiny-batch case (single grid step, no padding)
    x_small = jax.random.normal(k_x1, (8, input_dim), dtype=jnp.float32)
    logits_small = jax.block_until_ready(actor_forward(x_small, params))
    ref_small = actor_reference(x_small, params_f32)
    assert logits_small.shape == (8, action_dim)
    assert jnp.allclose(logits_small, ref_small, atol=5e-2, rtol=5e-2), \
        "small-batch mismatch vs f32 reference (beyond bf16 tolerance)"

    # 2) batched case (B=260 -> padded only to 264 rows, one tile)
    x_big = jax.random.normal(k_x2, (260, input_dim), dtype=jnp.float32)
    logits_big = jax.block_until_ready(actor_forward(x_big, params))
    ref_big = actor_reference(x_big, params_f32)
    assert logits_big.shape == (260, action_dim)
    assert jnp.allclose(logits_big, ref_big, atol=5e-2, rtol=5e-2), \
        "batched mismatch vs f32 reference (beyond bf16 tolerance)"

    print("KERNEL_OK")
</pallas_src>

<mosaic_0001>
module attributes {stable_mosaic.version = 11 : i64} {
  func.func @actor_kernel(%arg0: i32, %arg1: memref<8x32xbf16, #tpu.memory_space<vmem>>, %arg2: memref<32x128xbf16, #tpu.memory_space<vmem>>, %arg3: memref<1x128xf32, #tpu.memory_space<vmem>>, %arg4: memref<128x128xbf16, #tpu.memory_space<vmem>>, %arg5: memref<1x128xf32, #tpu.memory_space<vmem>>, %arg6: memref<128x8xbf16, #tpu.memory_space<vmem>>, %arg7: memref<1x8xf32, #tpu.memory_space<vmem>>, %arg8: memref<8x8xf32, #tpu.memory_space<vmem>>) attributes {dimension_semantics = [#tpu.dimension_semantics<parallel>], iteration_bounds = array<i64: 1>, scalar_prefetch = 0 : i64, scratch_operands = 0 : i64, tpu.core_type = #tpu.core_type<tc>, window_params = [{transform_indices = @transform_0, window_bounds = array<i64: 8, 32>}, {pipeline_mode = #tpu.pipeline_mode<synchronous>, transform_indices = @transform_1, window_bounds = array<i64: 32, 128>}, {pipeline_mode = #tpu.pipeline_mode<synchronous>, transform_indices = @transform_2, window_bounds = array<i64: 1, 128>}, {pipeline_mode = #tpu.pipeline_mode<synchronous>, transform_indices = @transform_3, window_bounds = array<i64: 128, 128>}, {pipeline_mode = #tpu.pipeline_mode<synchronous>, transform_indices = @transform_4, window_bounds = array<i64: 1, 128>}, {pipeline_mode = #tpu.pipeline_mode<synchronous>, transform_indices = @transform_5, window_bounds = array<i64: 128, 8>}, {pipeline_mode = #tpu.pipeline_mode<synchronous>, transform_indices = @transform_6, window_bounds = array<i64: 1, 8>}, {transform_indices = @transform_7, window_bounds = array<i64: 8, 8>}]} {
    %c0 = arith.constant 0 : index
    %c0_0 = arith.constant 0 : index
    %0 = vector.load %arg1[%c0, %c0_0] : memref<8x32xbf16, #tpu.memory_space<vmem>>, vector<8x32xbf16>
    %c0_1 = arith.constant 0 : index
    %c0_2 = arith.constant 0 : index
    %1 = vector.load %arg2[%c0_1, %c0_2] : memref<32x128xbf16, #tpu.memory_space<vmem>>, vector<32x128xbf16>
    %cst = arith.constant dense<0.000000e+00> : vector<8x128xf32>
    %2 = tpu.matmul %0, %1, %cst {dimension_numbers = #tpu.dot_dimension_numbers<[1], [0], [0], [1], [0, 0, 1, 1], [], []>} : vector<8x32xbf16>, vector<32x128xbf16>, vector<8x128xf32> -> vector<8x128xf32>
    %c0_3 = arith.constant 0 : index
    %c0_4 = arith.constant 0 : index
    %3 = vector.load %arg3[%c0_3, %c0_4] : memref<1x128xf32, #tpu.memory_space<vmem>>, vector<1x128xf32>
    %4 = vector.broadcast %3 : vector<1x128xf32> to vector<8x128xf32>
    %5 = arith.addf %2, %4 : vector<8x128xf32>
    %cst_5 = arith.constant 0.000000e+00 : f32
    %6 = vector.broadcast %cst_5 : f32 to vector<8x128xf32>
    %7 = arith.maximumf %5, %6 : vector<8x128xf32>
    %8 = arith.truncf %7 : vector<8x128xf32> to vector<8x128xbf16>
    %c0_6 = arith.constant 0 : index
    %c0_7 = arith.constant 0 : index
    %9 = vector.load %arg4[%c0_6, %c0_7] : memref<128x128xbf16, #tpu.memory_space<vmem>>, vector<128x128xbf16>
    %cst_8 = arith.constant dense<0.000000e+00> : vector<8x128xf32>
    %10 = tpu.matmul %8, %9, %cst_8 {dimension_numbers = #tpu.dot_dimension_numbers<[1], [0], [0], [1], [0, 0, 1, 1], [], []>} : vector<8x128xbf16>, vector<128x128xbf16>, vector<8x128xf32> -> vector<8x128xf32>
    %c0_9 = arith.constant 0 : index
    %c0_10 = arith.constant 0 : index
    %11 = vector.load %arg5[%c0_9, %c0_10] : memref<1x128xf32, #tpu.memory_space<vmem>>, vector<1x128xf32>
    %12 = vector.broadcast %11 : vector<1x128xf32> to vector<8x128xf32>
    %13 = arith.addf %10, %12 : vector<8x128xf32>
    %cst_11 = arith.constant 0.000000e+00 : f32
    %14 = vector.broadcast %cst_11 : f32 to vector<8x128xf32>
    %15 = arith.maximumf %13, %14 : vector<8x128xf32>
    %16 = arith.truncf %15 : vector<8x128xf32> to vector<8x128xbf16>
    %c0_12 = arith.constant 0 : index
    %c0_13 = arith.constant 0 : index
    %17 = vector.load %arg6[%c0_12, %c0_13] : memref<128x8xbf16, #tpu.memory_space<vmem>>, vector<128x8xbf16>
    %cst_14 = arith.constant dense<0.000000e+00> : vector<8x8xf32>
    %18 = tpu.matmul %16, %17, %cst_14 {dimension_numbers = #tpu.dot_dimension_numbers<[1], [0], [0], [1], [0, 0, 1, 1], [], []>} : vector<8x128xbf16>, vector<128x8xbf16>, vector<8x8xf32> -> vector<8x8xf32>
    %c0_15 = arith.constant 0 : index
    %c0_16 = arith.constant 0 : index
    %19 = vector.load %arg7[%c0_15, %c0_16] : memref<1x8xf32, #tpu.memory_space<vmem>>, vector<1x8xf32>
    %20 = vector.broadcast %19 : vector<1x8xf32> to vector<8x8xf32>
    %21 = arith.addf %18, %20 : vector<8x8xf32>
    %c0_17 = arith.constant 0 : index
    %c0_18 = arith.constant 0 : index
    %22 = vector.load %arg8[%c0_17, %c0_18] : memref<8x8xf32, #tpu.memory_space<vmem>>, vector<8x8xf32>
    tpu.vector_store %arg8[%c0_17, %c0_18], %21 {strides = array<i32>} : memref<8x8xf32, #tpu.memory_space<vmem>>, vector<8x8xf32>,
    return
  }
  func.func @transform_0(%arg0: i32) -> (i32, i32) {
    %c0_i32 = arith.constant 0 : i32
    %c0_i32_0 = arith.constant 0 : i32
    return %arg0, %c0_i32 : i32, i32
  }
  func.func @transform_1(%arg0: i32) -> (i32, i32) {
    %c0_i32 = arith.constant 0 : i32
    %c0_i32_0 = arith.constant 0 : i32
    %c0_i32_1 = arith.constant 0 : i32
    return %c0_i32, %c0_i32_0 : i32, i32
  }
  func.func @transform_2(%arg0: i32) -> (i32, i32) {
    %c0_i32 = arith.constant 0 : i32
    %c0_i32_0 = arith.constant 0 : i32
    %c0_i32_1 = arith.constant 0 : i32
    return %c0_i32, %c0_i32_0 : i32, i32
  }
  func.func @transform_3(%arg0: i32) -> (i32, i32) {
    %c0_i32 = arith.constant 0 : i32
    %c0_i32_0 = arith.constant 0 : i32
    %c0_i32_1 = arith.constant 0 : i32
    return %c0_i32, %c0_i32_0 : i32, i32
  }
  func.func @transform_4(%arg0: i32) -> (i32, i32) {
    %c0_i32 = arith.constant 0 : i32
    %c0_i32_0 = arith.constant 0 : i32
    %c0_i32_1 = arith.constant 0 : i32
    return %c0_i32, %c0_i32_0 : i32, i32
  }
  func.func @transform_5(%arg0: i32) -> (i32, i32) {
    %c0_i32 = arith.constant 0 : i32
    %c0_i32_0 = arith.constant 0 : i32
    %c0_i32_1 = arith.constant 0 : i32
    return %c0_i32, %c0_i32_0 : i32, i32
  }
  func.func @transform_6(%arg0: i32) -> (i32, i32) {
    %c0_i32 = arith.constant 0 : i32
    %c0_i32_0 = arith.constant 0 : i32
    %c0_i32_1 = arith.constant 0 : i32
    return %c0_i32, %c0_i32_0 : i32, i32
  }
  func.func @transform_7(%arg0: i32) -> (i32, i32) {
    %c0_i32 = arith.constant 0 : i32
    %c0_i32_0 = arith.constant 0 : i32
    return %arg0, %c0_i32 : i32, i32
  }
}

</mosaic_0001>

<bundles_post_ra>
// kernel: actor_forward.1
= control target key start
LH: loop header
LB: loop body
LE: loop exit
PB: predicated region body
PF: predicated region fallthrough
CT: control target
= control target key end

     0   :  { %v474_v1 = vmov 0.0   ;;  %vm475_vm0 = vmmov 0   ;;  %vm52_vm1 = vcmask 261120   ;;  %s619_s0 = inlined_call_operand.vmem [shape: bf16[8,32], index: 0, kind: input, shape index: {}]   ;;  %s620_s1 = inlined_call_operand.vmem [shape: bf16[32,128], index: 1, kind: input, shape index: {}]   ;;  %s621_s2 = inlined_call_operand.vmem [shape: f32[1,128], index: 2, kind: input, shape index: {}]   ;;  %s622_s3 = inlined_call_operand.vmem [shape: bf16[128,128], index: 3, kind: input, shape index: {}]   ;;  %s623_s4 = inlined_call_operand.vmem [shape: f32[1,128], index: 4, kind: input, shape index: {}]   ;;  %s624_s5 = inlined_call_operand.vmem [shape: bf16[128,8], index: 5, kind: input, shape index: {}]   ;;  %s625_s6 = inlined_call_operand.vmem [shape: f32[1,8], index: 6, kind: input, shape index: {}]   ;;  %s626_s7 = inlined_call_operand.hbm [shape: f32[8,8], index: 7, kind: output, shape index: {}]  }
   0x1   :  { %v432_v0 = vld [vmem:[%s620_s1] sm:$0xff]   ;;  %381 = vmatprep.subr.bf16.mxu0 %v474_v1  ;;  %389 = vmatprep.subr.bf16.mxu1 %v474_v1  ;;  %v433_v2 = vld [vmem:[%s620_s1 + $0x8] sm:$0xff]   ;;  %v436_v6 = vld [vmem:[%s622_s3 + $0x10] sm:$0xff]  }
   0x2   :  { %382 = vmatpush3.bf16.msra.mxu0 %v432_v0  ;;  %385 = vmatprep.mubr.msk.bf16.mxu0 %vm475_vm0, %v474_v1  ;;  %v434_v3 = vld [vmem:[%s622_s3] sm:$0xff]   ;;  %v435_v4 = vld [vmem:[%s622_s3 + $0x8] sm:$0xff]   ;;  %v437_v7 = vld [vmem:[%s622_s3 + $0x18] sm:$0xff]  }
   0x3   :  { %383 = vmatprep.subr.bf16.mxu0 %v474_v1  ;;  %405 = vmatprep.mubr.msk.bf16.mxu1 %vm475_vm0, %v474_v1  ;;  %v28_v5 = vld [vmem:[%s619_s0] sm:$0xf] }
   0x4   :  { %390 = vmatpush3.bf16.msra.mxu1 %v434_v3 }
   0x5   :  { %391 = vmatprep.subr.bf16.mxu1 %v474_v1 }
   0x6   :  { %384 = vmatpush3.bf16.msra.mxu0 %v433_v2 }
   0x7   :  { %409 = vmatprep.subr.bf16.mxu0 %v474_v1 }
   0x8   :  { %392 = vmatpush3.bf16.msra.mxu1 %v435_v4 }
   0x9   :  { %386 = vmatmul.mubr.msk.bf16.vlgmr.msra.gmra.mrb[0].mxu0 %vm52_vm1, %v28_v5  ;;  %393 = vmatprep.subr.bf16.mxu1 %v474_v1 }
   0xa   :  { %425 = vmatprep.mubr.msk.bf16.mxu0 %vm475_vm0, %v474_v1 }
   0xc   :  { %394 = vmatpush3.bf16.msra.mxu1 %v436_v6 }
   0xd   :  { %395 = vmatprep.subr.bf16.mxu1 %v474_v1 }
   0xe   :  { %12 = vsyncpa [#allocation3], 0  ;;  %v438_v8 = vld [vmem:[%s622_s3 + $0x20] sm:$0xff]   ;;  %v439_v9 = vld [vmem:[%s622_s3 + $0x28] sm:$0xff]   ;;  %s476_s16 = smov [#allocation2]   ;;  %vm322_vm2 = vcmask 64512  }
   0xf   :  { %v440_v10 = vld [vmem:[%s622_s3 + $0x30] sm:$0xff]   ;;  %v441_v11 = vld [vmem:[%s622_s3 + $0x38] sm:$0xff]   ;;  %v442_v12 = vld [vmem:[%s624_s5] sm:$0xff]   ;;  %s330_s17 = sshll.u32 %s476_s16, 4  ;;  %s331_s17 = int_to_ptr.vmem [resolvable:$true] %s330_s17 }
  0x10   :  { %396 = vmatpush3.bf16.msra.mxu1 %v437_v7  ;;  %410 = vmatpush3.bf16.msra.mxu0 %v442_v12  ;;  %v443_v13 = vld [vmem:[%s624_s5 + $0x8] sm:$0xff]   ;;  %v444_v14 = vld [vmem:[%s624_s5 + $0x10] sm:$0xff]   ;;  %v445_v15 = vld [vmem:[%s624_s5 + $0x18] sm:$0xff]   ;;  %p455_p1 = scmp.lt.s32.totalorder %s331_s17, %s331_s17 }
  0x11   :  { %397 = vmatprep.subr.bf16.mxu1 %v474_v1  ;;  %411 = vmatprep.subr.bf16.mxu0 %v474_v1  ;;  %v446_v16 = vld [vmem:[%s624_s5 + $0x20] sm:$0xff]   ;;  %v447_v17 = vld [vmem:[%s624_s5 + $0x28] sm:$0xff]   ;;  %v448_v26 = vld [vmem:[%s624_s5 + $0x30] sm:$0xff]  }
  0x12   :  { %v338_v18 = vld [vmem:[%s621_s2] ss:$0 sm:$0xff]  ;;  %v449_v27 = vld [vmem:[%s624_s5 + $0x38] sm:$0xff]  }
  0x13   :  { %v342_v28 = vld [vmem:[%s623_s4] ss:$0 sm:$0xff]  ;;  %s450_s4 = scalar_lea.vmem %s331_s17, 128 }
  0x14   :  { %398 = vmatpush3.bf16.msra.mxu1 %v438_v8  ;;  %412 = vmatpush3.bf16.msra.mxu0 %v443_v13  ;;  %v351_v36 = vld [vmem:[%s625_s6] ss:$0 sm:$0xff]  ;;  %p451_p0 = scmp.ne.s32.totalorder %s331_s17, %s450_s4  ;;  %p456_p2 = scmp.lt.s32.totalorder %s450_s4, %s450_s4 }
  0x15   :  { %399 = vmatprep.subr.bf16.mxu1 %v474_v1  ;;  %413 = vmatprep.subr.bf16.mxu0 %v474_v1 }
  0x16   :  { %p457_p3 = por %p456_p2, %p455_p1 }
  0x18   :  { %400 = vmatpush3.bf16.msra.mxu1 %v439_v9  ;;  %414 = vmatpush3.bf16.msra.mxu0 %v444_v14  ;;  %p458_p4 = pnand %p457_p3, %p451_p0 }
  0x19   :  { %401 = vmatprep.subr.bf16.mxu1 %v474_v1  ;;  %415 = vmatprep.subr.bf16.mxu0 %v474_v1 }
  0x1c   :  { %402 = vmatpush3.bf16.msra.mxu1 %v440_v10  ;;  %416 = vmatpush3.bf16.msra.mxu0 %v445_v15 }
  0x1d   :  { %403 = vmatprep.subr.bf16.mxu1 %v474_v1  ;;  %417 = vmatprep.subr.bf16.mxu0 %v474_v1 }
  0x20   :  { %404 = vmatpush3.bf16.msra.mxu1 %v441_v11  ;;  %418 = vmatpush3.bf16.msra.mxu0 %v446_v16 }
  0x21   :  { %419 = vmatprep.subr.bf16.mxu0 %v474_v1 }
  0x24   :  { %420 = vmatpush3.bf16.msra.mxu0 %v447_v17 }
  0x25   :  { %421 = vmatprep.subr.bf16.mxu0 %v474_v1 }
  0x28   :  { %422 = vmatpush3.bf16.msra.mxu0 %v448_v26 }
  0x29   :  { %423 = vmatprep.subr.bf16.mxu0 %v474_v1 }
  0x2c   :  { %424 = vmatpush3.bf16.msra.mxu0 %v449_v27 }
  0xdc   :  { %v90_v19 = vpop.f32.mrb[0].mxu0 }
  0xdd   :  { %v91_v20 = vadd.f32 %v338_v18, %v90_v19  ;;  %v387_v21 = vpop.f32.mrb[1].mxu0 }
  0xde   :  { %v93_v22 = vpop.f32.mrb[2].mxu0 }
  0xdf   :  { %v96_v23 = vmax.f32 %v91_v20, 0.0  ;;  %v388_v24 = vpop.f32.mrb[3].mxu0 }
  0xe1   :  { %v97_v25 = vpack.c.bf16 %v96_v23, %v96_v23 }
  0xe3   :  { %406 = vmatmul.mubr.bf16.vlgmr.msra.gmra.mrb[0].mxu1 %v97_v25 }
 0x1b6   :  { %v203_v29 = vpop.f32.mrb[0].mxu1 }
 0x1b7   :  { %v204_v30 = vadd.f32 %v342_v28, %v203_v29  ;;  %v407_v31 = vpop.f32.mrb[1].mxu1 }
 0x1b8   :  { %v206_v32 = vpop.f32.mrb[2].mxu1 }
 0x1b9   :  { %v209_v33 = vmax.f32 %v204_v30, 0.0  ;;  %v408_v34 = vpop.f32.mrb[3].mxu1 }
 0x1bb   :  { %v210_v35 = vpack.c.bf16 %v209_v33, %v209_v33 }
 0x1bd   :  { %426 = vmatmul.mubr.bf16.vlgmr.msra.gmra.mrb[4].mxu0 %v210_v35 }
 0x290   :  { %v316_v37 = vpop.f32.mrb[4].mxu0 }
 0x291   :  { %v317_v38 = vadd.f32 %v351_v36, %v316_v37  ;;  %v427_v39 = vpop.f32.mrb[5].mxu0 }
 0x292   :  { %v319_v40 = vpop.f32.mrb[6].mxu0 }
 0x293   :  { %v428_v41 = vpop.f32.mrb[7].mxu0  ;;  %323 = vst.msk [vmem:[#allocation2] sm:$0xff] %vm322_vm2, %v317_v38 }
 0x294   :  { %461 = shalt.err (!%p458_p4)
}
 0x295   :  { %s462_s6 = scalar_lea.hbm %s626_s7, 128 }
 0x296   :  { %p463_p5 = scmp.ne.s32.totalorder %s626_s7, %s462_s6  ;;  %p466_p6 = scmp.lt.u32.totalorder %s462_s6, %s626_s7 }
 0x298   :  { %p468_p7 = pnand %p466_p6, %p463_p5 }
 0x29a   :  { %471 = shalt.err (!%p468_p7)
}
 0x29b   :  { %333 = dma.vmem_to_hbm [thread:$0]  %s331_s17, 128, %s626_s7, [#allocation3]  }
 0x29c   :  { %472 = dma.done.wait [#allocation3], 128  }
 0x29d   :  { %473 = vsyncadd [#allocation3], 4294967168 }
 0x29e   :  { %337 = vsyncpa [#allocation3], 1 }

</bundles_post_ra>
